<compile_context>
chip_gen: v7x
topology: tpu7x:2x2x1
jax: 0.10.0
libtpu: 0.0.40
codegen_flags: <defaults>
</compile_context>

<pallas_src>
import functools

import jax
import jax.numpy as jnp
from jax.experimental import pallas as pl
from jax.experimental.pallas import tpu as pltpu


def _round_up(n, m):
    return (n + m - 1) // m * m


def mlp_kernel(x_ref, params_ref, out_ref, *, layout):
    """Fused MLP forward for one batch tile.

    layout: tuple of (w_row_off, w_rows, b_row_off, width) per layer, all
    static Python ints, describing slices of the packed parameter array.
    """
    n_layers = len(layout)
    t = x_ref[...]
    for i, (w_off, w_rows, b_off, width) in enumerate(layout):
        w = params_ref[w_off:w_off + w_rows, :width]
        b = params_ref[b_off:b_off + 1, :width]
        t = jnp.dot(t, w, preferred_element_type=jnp.float32) + b
        if i < n_layers - 1:  # ReLU on all but the output layer
            t = jnp.maximum(t, 0.0)
    out_ref[...] = t.astype(out_ref.dtype)


def pack_params(params):
    """Pack (W[in,out], b[1,out]) pairs into one lane-dense f32 array.

    Per layer i the packed array holds
      rows [w_off, w_off+w_rows) x cols [0, width)   zero-padded W_i
      row   b_off                x cols [0, width)   b_i  (in an 8-row pad)
    with width = round_up(fan_out, 128) and w_rows = padded fan_in
    (round_up(in_dim, 8) for layer 0, previous layer's padded width after).

    Returns (packed, layout, in_pad, out_pad_last).
    """
    n = len(params)
    in_pads, out_pads = [], []
    for i, (w, _) in enumerate(params):
        fan_in, fan_out = w.shape
        out_pads.append(_round_up(fan_out, 128))
        in_pads.append(_round_up(fan_in, 8) if i == 0 else out_pads[i - 1])
    wcol = max(out_pads)

    layout, blocks, off = [], [], 0
    for i, (w, b) in enumerate(params):
        fan_in, fan_out = w.shape
        in_pad, out_pad = in_pads[i], out_pads[i]
        w_pad = jnp.zeros((in_pad, wcol), jnp.float32).at[:fan_in, :fan_out].set(
            w.astype(jnp.float32))
        b_pad = jnp.zeros((8, wcol), jnp.float32).at[0, :fan_out].set(
            jnp.reshape(b, (-1,)).astype(jnp.float32))
        blocks.extend([w_pad, b_pad])
        layout.append((off, in_pad, off + in_pad, out_pad))
        off += in_pad + 8
    packed = jnp.concatenate(blocks, axis=0)
    return packed, tuple(layout), in_pads[0], out_pads[-1]


def mlp_forward(x, params, *, block_batch=256):
    """params: list of (W, b), W shape (in_dim, out_dim) (transposed vs torch)."""
    batch, in_dim = x.shape
    out_dim = params[-1][0].shape[1]

    packed, layout, in_pad, out_pad = pack_params(params)

    tb = min(block_batch, _round_up(batch, 8))
    batch_pad = _round_up(batch, tb)
    n_blocks = batch_pad // tb

    x_p = x.astype(jnp.float32)
    if batch_pad != batch or in_pad != in_dim:
        x_p = jnp.zeros((batch_pad, in_pad), jnp.float32).at[:batch, :in_dim].set(x_p)

    flops = 2 * batch_pad * sum(w_rows * width for (_, w_rows, _, width) in layout)
    bytes_accessed = 4 * (x_p.size + packed.size + batch_pad * out_pad)

    kernel = functools.partial(mlp_kernel, layout=layout)

    out = pl.pallas_call(
        kernel,
        out_shape=jax.ShapeDtypeStruct((batch_pad, out_pad), jnp.float32),
        grid_spec=pltpu.PrefetchScalarGridSpec(
            num_scalar_prefetch=0,
            grid=(n_blocks,),
            in_specs=[
                # batch tile of activations
                pl.BlockSpec((tb, in_pad), lambda i: (i, 0)),
                # packed params: constant index_map -> stays VMEM-resident
                pl.BlockSpec(packed.shape, lambda i: (0, 0)),
            ],
            out_specs=pl.BlockSpec((tb, out_pad), lambda i: (i, 0)),
        ),
        compiler_params=pltpu.CompilerParams(
            dimension_semantics=("parallel",)),
        cost_estimate=pl.CostEstimate(
            flops=flops, transcendentals=0, bytes_accessed=bytes_accessed),
    )(x_p, packed)

    return out[:batch, :out_dim]


def init_params(key, in_dim, out_dim, h_dims):
    """Kaiming-uniform-ish init mirroring nn.Linear; W returned as (in, out)."""
    dims = [in_dim] + list(h_dims) + [out_dim]
    params = []
    for i in range(len(dims) - 1):
        fan_in, fan_out = dims[i], dims[i + 1]
        key, kw, kb = jax.random.split(key, 3)
        bound = 1.0 / jnp.sqrt(jnp.float32(fan_in))
        w = jax.random.uniform(kw, (fan_in, fan_out), jnp.float32, -bound, bound)
        b = jax.random.uniform(kb, (1, fan_out), jnp.float32, -bound, bound)
        params.append((w, b))
    return params


def reference_forward(x, params):
    t = x
    n = len(params)
    for i, (w, b) in enumerate(params):
        t = t @ w + b
        if i < n - 1:
            t = jnp.maximum(t, 0.0)
    return t


if __name__ == "__main__":
    key = jax.random.PRNGKey(0)
    key, kx = jax.random.split(key)

    # DDQN-like shapes: 16-dim state, two hidden layers of 32, 4 actions.
    # batch=512 exercises the batch-tiled grid (2 steps of 256 rows).
    batch, in_dim, out_dim = 512, 16, 4
    h_dims = [32, 32]

    x = jax.random.normal(kx, (batch, in_dim), dtype=jnp.float32)
    params = init_params(key, in_dim, out_dim, h_dims)

    out = mlp_forward(x, params)
    out = jax.block_until_ready(out)

    ref = reference_forward(x, params)
    assert out.shape == (batch, out_dim), out.shape
    assert jnp.allclose(out, ref, atol=1e-4, rtol=1e-4), "mismatch vs reference"

    print("KERNEL_OK")
</pallas_src>

<mosaic_0001>
module attributes {stable_mosaic.version = 11 : i64} {
  func.func @mlp_kernel(%arg0: i32, %arg1: memref<256x16xf32, #tpu.memory_space<vmem>>, %arg2: memref<296x128xf32, #tpu.memory_space<vmem>>, %arg3: memref<256x128xf32, #tpu.memory_space<vmem>>) attributes {dimension_semantics = [#tpu.dimension_semantics<parallel>], iteration_bounds = array<i64: 2>, scalar_prefetch = 0 : i64, scratch_operands = 0 : i64, tpu.core_type = #tpu.core_type<tc>, window_params = [{transform_indices = @transform_0, window_bounds = array<i64: 256, 16>}, {pipeline_mode = #tpu.pipeline_mode<synchronous>, transform_indices = @transform_1, window_bounds = array<i64: 296, 128>}, {transform_indices = @transform_2, window_bounds = array<i64: 256, 128>}]} {
    %c0 = arith.constant 0 : index
    %c0_0 = arith.constant 0 : index
    %0 = vector.load %arg1[%c0, %c0_0] : memref<256x16xf32, #tpu.memory_space<vmem>>, vector<256x16xf32>
    %c0_1 = arith.constant 0 : index
    %c0_2 = arith.constant 0 : index
    %1 = vector.load %arg2[%c0_1, %c0_2] : memref<296x128xf32, #tpu.memory_space<vmem>>, vector<16x128xf32>
    %c16 = arith.constant 16 : index
    %c0_3 = arith.constant 0 : index
    %2 = vector.load %arg2[%c16, %c0_3] : memref<296x128xf32, #tpu.memory_space<vmem>>, vector<1x128xf32>
    %cst = arith.constant dense<0.000000e+00> : vector<256x128xf32>
    %3 = tpu.matmul %0, %1, %cst {dimension_numbers = #tpu.dot_dimension_numbers<[1], [0], [0], [1], [0, 0, 1, 1], [], []>} : vector<256x16xf32>, vector<16x128xf32>, vector<256x128xf32> -> vector<256x128xf32>
    %4 = vector.broadcast %2 : vector<1x128xf32> to vector<256x128xf32>
    %5 = arith.addf %3, %4 : vector<256x128xf32>
    %cst_4 = arith.constant 0.000000e+00 : f32
    %6 = vector.broadcast %cst_4 : f32 to vector<256x128xf32>
    %7 = arith.maximumf %5, %6 : vector<256x128xf32>
    %c24 = arith.constant 24 : index
    %c0_5 = arith.constant 0 : index
    %8 = vector.load %arg2[%c24, %c0_5] : memref<296x128xf32, #tpu.memory_space<vmem>>, vector<128x128xf32>
    %c152 = arith.constant 152 : index
    %c0_6 = arith.constant 0 : index
    %9 = vector.load %arg2[%c152, %c0_6] : memref<296x128xf32, #tpu.memory_space<vmem>>, vector<1x128xf32>
    %cst_7 = arith.constant dense<0.000000e+00> : vector<256x128xf32>
    %10 = tpu.matmul %7, %8, %cst_7 {dimension_numbers = #tpu.dot_dimension_numbers<[1], [0], [0], [1], [0, 0, 1, 1], [], []>} : vector<256x128xf32>, vector<128x128xf32>, vector<256x128xf32> -> vector<256x128xf32>
    %11 = vector.broadcast %9 : vector<1x128xf32> to vector<256x128xf32>
    %12 = arith.addf %10, %11 : vector<256x128xf32>
    %cst_8 = arith.constant 0.000000e+00 : f32
    %13 = vector.broadcast %cst_8 : f32 to vector<256x128xf32>
    %14 = arith.maximumf %12, %13 : vector<256x128xf32>
    %c160 = arith.constant 160 : index
    %c0_9 = arith.constant 0 : index
    %15 = vector.load %arg2[%c160, %c0_9] : memref<296x128xf32, #tpu.memory_space<vmem>>, vector<128x128xf32>
    %c288 = arith.constant 288 : index
    %c0_10 = arith.constant 0 : index
    %16 = vector.load %arg2[%c288, %c0_10] : memref<296x128xf32, #tpu.memory_space<vmem>>, vector<1x128xf32>
    %cst_11 = arith.constant dense<0.000000e+00> : vector<256x128xf32>
    %17 = tpu.matmul %14, %15, %cst_11 {dimension_numbers = #tpu.dot_dimension_numbers<[1], [0], [0], [1], [0, 0, 1, 1], [], []>} : vector<256x128xf32>, vector<128x128xf32>, vector<256x128xf32> -> vector<256x128xf32>
    %18 = vector.broadcast %16 : vector<1x128xf32> to vector<256x128xf32>
    %19 = arith.addf %17, %18 : vector<256x128xf32>
    %c0_12 = arith.constant 0 : index
    %c0_13 = arith.constant 0 : index
    %20 = vector.load %arg3[%c0_12, %c0_13] : memref<256x128xf32, #tpu.memory_space<vmem>>, vector<256x128xf32>
    tpu.vector_store %arg3[%c0_12, %c0_13], %19 {strides = array<i32>} : memref<256x128xf32, #tpu.memory_space<vmem>>, vector<256x128xf32>,
    return
  }
  func.func @transform_0(%arg0: i32) -> (i32, i32) {
    %c0_i32 = arith.constant 0 : i32
    %c0_i32_0 = arith.constant 0 : i32
    return %arg0, %c0_i32 : i32, i32
  }
  func.func @transform_1(%arg0: i32) -> (i32, i32) {
    %c0_i32 = arith.constant 0 : i32
    %c0_i32_0 = arith.constant 0 : i32
    %c0_i32_1 = arith.constant 0 : i32
    return %c0_i32, %c0_i32_0 : i32, i32
  }
  func.func @transform_2(%arg0: i32) -> (i32, i32) {
    %c0_i32 = arith.constant 0 : i32
    %c0_i32_0 = arith.constant 0 : i32
    return %arg0, %c0_i32 : i32, i32
  }
}

</mosaic_0001>

<bundles_post_ra>
// kernel: tpu_custom_call.1
= control target key start
LH: loop header
LB: loop body
LE: loop exit
PB: predicated region body
PF: predicated region fallthrough
CT: control target
= control target key end

     0   :  { %7 = vsyncpa [#allocation3], 0  ;;  %s2182_s0 = inlined_call_operand.vmem [shape: f32[512,16], index: 0, kind: input, shape index: {}]   ;;  %s2183_s1 = inlined_call_operand.vmem [shape: f32[296,128], index: 1, kind: input, shape index: {}]   ;;  %s2184_s2 = inlined_call_operand.hbm [shape: f32[512,128], index: 2, kind: output, shape index: {}]  }
   0x1   :  { %9 = vsyncpa [#allocation3 + $0x1], 0  ;;  %s1753_s9 = smov 0   ;;  %s1755_s10 = smov 0  }
   0x2   :  { %s1757_s11 = smov 0   ;;  %s1759_s12 = smov 0  }
   0x3 LB: > { %s1774_s13 = sadd.s32 4294967295, %s1733_s12   ;;  %s1170_s14 = sadd.s32 4294967294, %s1733_s12   ;;  %s1733_s12 = sphi %s1759_s12, %s2190_s12   ;;  %s1729_s11 = sphi %s1757_s11, %s2189_s11   ;;  %s1725_s10 = sphi %s1755_s10, %s2188_s10   ;;  %s1721_s9 = sphi %s1753_s9, %s2187_s9  }
   0x4   : > { %s1778_s15 = sadd.s32 1, %s1733_s12   ;;  %s69_s16 = sadd.s32 1, %s1729_s11 }
   0x5   : > { %s66_s17 = ssub.s32 %s1733_s12, %s1778_s15  ;;  %p79_p0 = scmp.ne.s32.totalorder %s1729_s11, %s1725_s10 }
   0x6   : > { %p67_p1 = scmp.eq.s32.totalorder %s66_s17, 0  ;;  %p80_p2 = scmp.eq.s32.totalorder %s1774_s13, 1 }
   0x7   : > { %p85_p3 = scmp.ne.s32.totalorder %s1725_s10, %s1721_s9  ;;  %p86_p4 = scmp.eq.s32.totalorder %s1170_s14, 1 }
   0x8   : > { %s1789_s18 = scalar_select %p67_p1, %s1729_s11, %s69_s16  }
   0x9   : > { %p1791_p5 = por %p80_p2, %p79_p0  ;;  %p1795_p6 = por %p86_p4, %p85_p3 }
   0xa   : > { %p1173_p7 = scmp.ge.s32.totalorder %s1733_s12, 1  ;;  %p116_p8 = scmp.lt.s32.totalorder %s1733_s12, 3 }
   0xc   : > { %p117_p9 = pnand %p1173_p7, %p116_p8 }
   0xd   : > { %v177_v0 = vld [vmem:[%s2183_s1] sm:$0xff] (!%p117_p9)  ;;  %v178_v1 = vld [vmem:[%s2183_s1 + $0x8] sm:$0xff] (!%p117_p9)  ;;  %s1175_s25 = sshll.u32 (!%p117_p9), %s1774_s13, 5  ;;  %v538_v2 = vld [vmem:[%s2183_s1 + $0x18] sm:$0xff] (!%p117_p9)  ;;  %vm184_vm0 = vcmask (!%p117_p9), 130048   ;;  %s135_s23 = sand.u32 (!%p117_p9), 1, %s1725_s10  }
   0xe   : > { %120 = sbr.rel (%p117_p9) target bundleno = 752 (0x2f0), region = 28  ;;  %v1560_v3 = vpack.c.bf16 (!%p117_p9), %v178_v1, %v177_v0  ;;  %p139_p10 = scmp.lt.s32.totalorder (!%p117_p9), %s1175_s25, 63  ;;  %v539_v4 = vld [vmem:[%s2183_s1 + $0x20] sm:$0xff] (!%p117_p9)  ;;  %v540_v9 = vld [vmem:[%s2183_s1 + $0x28] sm:$0xff] (!%p117_p9)  ;;  %v541_v10 = vld [vmem:[%s2183_s1 + $0x30] sm:$0xff] (!%p117_p9) }
   0xf   : > { %v1564_v5 = vpack.c.bf16 (!%p117_p9), %v539_v4, %v538_v2  ;;  %v1568_v15 = vpack.c.bf16 (!%p117_p9), %v541_v10, %v540_v9  ;;  %v542_v17 = vld [vmem:[%s2183_s1 + $0x38] sm:$0xff] (!%p117_p9)  ;;  %v543_v18 = vld [vmem:[%s2183_s1 + $0x40] sm:$0xff] (!%p117_p9)  ;;  %v544_v24 = vld [vmem:[%s2183_s1 + $0x48] sm:$0xff] (!%p117_p9)  ;;  %s1174_s24 = sshll.u32 (!%p117_p9), %s135_s23, 8  ;;  %s1735_s6 = smov (!%p117_p9), [#allocation2]  }
  0x10   : > { %1561 = vmatprep.subr.bf16.mxu0 (!%p117_p9), %v1560_v3  ;;  %1628 = vmatprep.subr.bf16.mxu1 (!%p117_p9), %v1560_v3  ;;  %v1572_v23 = vpack.c.bf16 (!%p117_p9), %v543_v18, %v542_v17  ;;  %v545_v25 = vld [vmem:[%s2183_s1 + $0x50] sm:$0xff] (!%p117_p9)  ;;  %v546_v31 = vld [vmem:[%s2183_s1 + $0x58] sm:$0xff] (!%p117_p9)  ;;  %v547_v32 = vld [vmem:[%s2183_s1 + $0x60] sm:$0xff] (!%p117_p9)  ;;  %s2066_s27 = scalar_lea.vmem (!%p117_p9), [#allocation2], %s1174_s24  ;;  %s1675_s7 = sshll.u32 (!%p117_p9), %s1735_s6, 4  ;;  %s1676_s7 = int_to_ptr.vmem [resolvable:$false] %s1675_s7 }
  0x11   : > { %1563 = vmatpush3.bf16.msra.mxu0 (!%p117_p9), %v1560_v3  ;;  %1629 = vmatpush3.bf16.msra.mxu1 (!%p117_p9), %v1560_v3  ;;  %v1576_v30 = vpack.c.bf16 (!%p117_p9), %v545_v25, %v544_v24  ;;  %v1580_v37 = vpack.c.bf16 (!%p117_p9), %v547_v32, %v546_v31  ;;  %v548_v38 = vld [vmem:[%s2183_s1 + $0x68] sm:$0xff] (!%p117_p9)  ;;  %v549_v39 = vld [vmem:[%s2183_s1 + $0x70] sm:$0xff] (!%p117_p9)  ;;  %v550_v45 = vld [vmem:[%s2183_s1 + $0x78] sm:$0xff] (!%p117_p9)  ;;  %s1108_s28 = sshll.u32 (!%p117_p9), %s2066_s27, 4  ;;  %s1677_s8 = scalar_lea.vmem (!%p117_p9), %s1676_s7, 8192  ;;  %s2134_s28 = int_to_ptr.vmem [resolvable:$true] %s1108_s28 }
  0x12   : > { %1565 = vmatprep.subr.bf16.mxu1 (!%p117_p9), %v1564_v5  ;;  %v1584_v44 = vpack.c.bf16 (!%p117_p9), %v549_v39, %v548_v38  ;;  %v551_v46 = vld [vmem:[%s2183_s1 + $0x80] sm:$0xff] (!%p117_p9)  ;;  %v552_v56 = vld [vmem:[%s2183_s1 + $0x88] sm:$0xff] (!%p117_p9)  ;;  %v553_v57 = vld [vmem:[%s2183_s1 + $0x90] sm:$0xff] (!%p117_p9)  ;;  %s1671_s4 = scalar_lea.vmem (!%p117_p9), %s2134_s28, 4096  ;;  %p1678_p0 = scmp.lt.s32.totalorder (!%p117_p9), %s2134_s28, %s1676_s7 }
  0x13   : > { %v1588_v51 = vpack.c.bf16 (!%p117_p9), %v551_v46, %v550_v45  ;;  %v1592_v58 = vpack.c.bf16 (!%p117_p9), %v553_v57, %v552_v56  ;;  %v816_v59 = vld [vmem:[%s2183_s1 + $0xa0] sm:$0xff] (!%p117_p9)  ;;  %v817_v60 = vld [vmem:[%s2183_s1 + $0xa8] sm:$0xff] (!%p117_p9)  ;;  %v818_v61 = vld [vmem:[%s2183_s1 + $0xb0] sm:$0xff] (!%p117_p9)  ;;  %p1672_p11 = scmp.ne.s32.totalorder (!%p117_p9), %s2134_s28, %s1671_s4  ;;  %p1679_p1 = scmp.lt.s32.totalorder (!%p117_p9), %s1677_s8, %s1671_s4 }
  0x14   : > { %v1596_v62 = vpack.c.bf16 (!%p117_p9), %v817_v60, %v816_v59  ;;  %v819_v63 = vld [vmem:[%s2183_s1 + $0xb8] sm:$0xff] (!%p117_p9)  ;;  %v820_v1 = vld [vmem:[%s2183_s1 + $0xc0] sm:$0xff] (!%p117_p9)  ;;  %v821_v2 = vld [vmem:[%s2183_s1 + $0xc8] sm:$0xff] (!%p117_p9) }
  0x15   : > { %s2192_s25 = smov (!%p139_p10, %s1175_s25), 63  ;;  %v1600_v0 = vpack.c.bf16 %v819_v63, %v818_v61  ;;  %v1604_v3 = vpack.c.bf16 %v821_v2, %v820_v1  ;;  %v822_v4 = vld [vmem:[%s2183_s1 + $0xd0] sm:$0xff]  ;;  %p1673_p12 = pnand %p1672_p11, %p1791_p5 }
  0x16   : > { %s1176_s30 = sshll.u32 %s2192_s25, 3  ;;  %1597 = vmatprep.subr.bf16.mxu0 %v1596_v62  ;;  %v826_v10 = vld [vmem:[%s2183_s1 + $0xf0] sm:$0xff]  ;;  %p1680_p2 = por %p1679_p1, %p1678_p0 }
  0x17   : > { %s1817_s5 = scalar_lea.vmem %s2182_s0, %s1176_s30  ;;  %p1674_p13 = pneg %p1673_p12 }
  0x18   : > { %v145_v6 = vld [vmem:[%s1817_s5] sm:$0xff]  ;;  %v146_v7 = vld [vmem:[%s1817_s5 + $0x8] sm:$0xff]  ;;  %v147_v8 = vld [vmem:[%s1817_s5 + $0x10] sm:$0xff] }
  0x19   : > { %1352 = vmatprep.mubr.msk.f32.mxu0 %vm184_vm0, %v145_v6  ;;  %v148_v11 = vld [vmem:[%s1817_s5 + $0x18] sm:$0xff]  ;;  %v149_v12 = vld [vmem:[%s1817_s5 + $0x20] sm:$0xff]  ;;  %v162_v14 = vld [vmem:[%s1817_s5 + $0x88] sm:$0xff]  ;;  %p1681_p3 = pnand %p1680_p2, %p1674_p13 }
  0x1a   : > { %1353 = vmatmul.mubr.msk.f32.vlgmr.msra.gmra.mrb[0].mxu0 %vm184_vm0, %v146_v7  ;;  %v161_v13 = vld [vmem:[%s1817_s5 + $0x80] sm:$0xff]  ;;  %v163_v16 = vld [vmem:[%s1817_s5 + $0x90] sm:$0xff]  ;;  %v150_v19 = vld [vmem:[%s1817_s5 + $0x28] sm:$0xff] }
  0x1b   : > { %1355 = vmatprep.mubr.msk.f32.mxu0 %vm184_vm0, %v147_v8  ;;  %1376 = vmatprep.mubr.msk.f32.mxu1 %vm184_vm0, %v161_v13  ;;  %v151_v20 = vld [vmem:[%s1817_s5 + $0x30] sm:$0xff]  ;;  %v164_v21 = vld [vmem:[%s1817_s5 + $0x98] sm:$0xff]  ;;  %v165_v22 = vld [vmem:[%s1817_s5 + $0xa0] sm:$0xff] }
  0x1c   : > { %1377 = vmatmul.mubr.msk.f32.vlgmr.msra.gmra.mrb[0].mxu1 %vm184_vm0, %v162_v14  ;;  %v152_v26 = vld [vmem:[%s1817_s5 + $0x38] sm:$0xff]  ;;  %v153_v27 = vld [vmem:[%s1817_s5 + $0x40] sm:$0xff]  ;;  %v166_v28 = vld [vmem:[%s1817_s5 + $0xa8] sm:$0xff]  ;;  %1599 = vmatpush3.bf16.msra.mxu0 %v1596_v62 }
  0x1d   : > { %1379 = vmatprep.mubr.msk.f32.mxu1 %vm184_vm0, %v163_v16  ;;  %1567 = vmatpush3.bf16.msra.mxu1 %v1564_v5  ;;  %v167_v29 = vld [vmem:[%s1817_s5 + $0xb0] sm:$0xff]  ;;  %v154_v33 = vld [vmem:[%s1817_s5 + $0x48] sm:$0xff]  ;;  %v168_v35 = vld [vmem:[%s1817_s5 + $0xb8] sm:$0xff] }
  0x1e   : > { %1356 = vmatmul.mubr.msk.f32.gmra.mrb[2].mxu0 %vm184_vm0, %v148_v11  ;;  %1569 = vmatprep.subr.bf16.mxu1 %v1568_v15  ;;  %v155_v34 = vld [vmem:[%s1817_s5 + $0x50] sm:$0xff]  ;;  %v169_v36 = vld [vmem:[%s1817_s5 + $0xc0] sm:$0xff]  ;;  %v156_v40 = vld [vmem:[%s1817_s5 + $0x58] sm:$0xff] }
  0x1f   : > { %1358 = vmatprep.mubr.msk.f32.mxu0 %vm184_vm0, %v149_v12  ;;  %v157_v41 = vld [vmem:[%s1817_s5 + $0x60] sm:$0xff]  ;;  %v170_v42 = vld [vmem:[%s1817_s5 + $0xc8] sm:$0xff]  ;;  %v171_v43 = vld [vmem:[%s1817_s5 + $0xd0] sm:$0xff]  ;;  %1601 = vmatprep.subr.bf16.mxu0 %v1600_v0 }
  0x20   : > { %1380 = vmatmul.mubr.msk.f32.gmra.mrb[2].mxu1 %vm184_vm0, %v164_v21  ;;  %v158_v47 = vld [vmem:[%s1817_s5 + $0x68] sm:$0xff]  ;;  %v159_v48 = vld [vmem:[%s1817_s5 + $0x70] sm:$0xff]  ;;  %v172_v49 = vld [vmem:[%s1817_s5 + $0xd8] sm:$0xff]  ;;  %1603 = vmatpush3.bf16.msra.mxu0 %v1600_v0 }
  0x21   : > { %1382 = vmatprep.mubr.msk.f32.mxu1 %vm184_vm0, %v165_v22  ;;  %1571 = vmatpush3.bf16.msra.mxu1 %v1568_v15  ;;  %v173_v50 = vld [vmem:[%s1817_s5 + $0xe0] sm:$0xff]  ;;  %v160_v52 = vld [vmem:[%s1817_s5 + $0x78] sm:$0xff]  ;;  %v174_v53 = vld [vmem:[%s1817_s5 + $0xe8] sm:$0xff] }
  0x22   : > { %1359 = vmatmul.mubr.msk.f32.gmra.mrb[4].mxu0 %vm184_vm0, %v150_v19  ;;  %1573 = vmatprep.subr.bf16.mxu1 %v1572_v23  ;;  %v175_v54 = vld [vmem:[%s1817_s5 + $0xf0] sm:$0xff]  ;;  %v176_v55 = vld [vmem:[%s1817_s5 + $0xf8] sm:$0xff]  ;;  %v824_v7 = vld [vmem:[%s2183_s1 + $0xe0] sm:$0xff]  ;;  %s1217_s5 = sshll.u32 %s1774_s13, 12  ;;  %s2141_s13 = scalar_lea.sflag [#allocation3], %s135_s23 }
  0x23   : > { %1361 = vmatprep.mubr.msk.f32.mxu0 %vm184_vm0, %v151_v20  ;;  %v823_v5 = vld [vmem:[%s2183_s1 + $0xd8] sm:$0xff]  ;;  %1605 = vmatprep.subr.bf16.mxu0 %v1604_v3  ;;  %v825_v8 = vld [vmem:[%s2183_s1 + $0xe8] sm:$0xff]  ;;  %v828_v13 = vld [vmem:[%s2183_s1 + $0x100] sm:$0xff]  ;;  %s2132_s3 = scalar_lea.hbm %s2184_s2, %s1217_s5 }
  0x24   : > { %1383 = vmatmul.mubr.msk.f32.gmra.mrb[4].mxu1 %vm184_vm0, %v166_v28  ;;  %v1608_v6 = vpack.c.bf16 %v823_v5, %v822_v4  ;;  %1607 = vmatpush3.bf16.msra.mxu0 %v1604_v3  ;;  %v1612_v9 = vpack.c.bf16 %v825_v8, %v824_v7  ;;  %v827_v11 = vld [vmem:[%s2183_s1 + $0xf8] sm:$0xff]  ;;  %v829_v14 = vld [vmem:[%s2183_s1 + $0x108] sm:$0xff]  ;;  %v1970_v16 = vld [vmem:[%s2183_s1 + $0x10] ss:$0 sm:$0xff] }
  0x25   : > { %1385 = vmatprep.mubr.msk.f32.mxu1 %vm184_vm0, %v167_v29  ;;  %1575 = vmatpush3.bf16.msra.mxu1 %v1572_v23  ;;  %v1616_v12 = vpack.c.bf16 %v827_v11, %v826_v10  ;;  %v1620_v15 = vpack.c.bf16 %v829_v14, %v828_v13 }
  0x26   : > { %1362 = vmatmul.mubr.msk.f32.gmra.mrb[6].mxu0 %vm184_vm0, %v152_v26  ;;  %1577 = vmatprep.subr.bf16.mxu1 %v1576_v30 }
  0x27   : > { %1364 = vmatprep.mubr.msk.f32.mxu0 %vm184_vm0, %v153_v27  ;;  %1609 = vmatprep.subr.bf16.mxu0 %v1608_v6 }
  0x28   : > { %1386 = vmatmul.mubr.msk.f32.gmra.mrb[6].mxu1 %vm184_vm0, %v168_v35  ;;  %1611 = vmatpush3.bf16.msra.mxu0 %v1608_v6 }
  0x29   : > { %1388 = vmatprep.mubr.msk.f32.mxu1 %vm184_vm0, %v169_v36  ;;  %1579 = vmatpush3.bf16.msra.mxu1 %v1576_v30 }
  0x2a   : > { %1365 = vmatmul.mubr.msk.f32.gmra.mrb[8].mxu0 %vm184_vm0, %v154_v33  ;;  %1581 = vmatprep.subr.bf16.mxu1 %v1580_v37 }
  0x2b   : > { %1367 = vmatprep.mubr.msk.f32.mxu0 %vm184_vm0, %v155_v34  ;;  %1613 = vmatprep.subr.bf16.mxu0 %v1612_v9 }
  0x2c   : > { %1389 = vmatmul.mubr.msk.f32.gmra.mrb[8].mxu1 %vm184_vm0, %v170_v42  ;;  %1615 = vmatpush3.bf16.msra.mxu0 %v1612_v9 }
  0x2d   : > { %1391 = vmatprep.mubr.msk.f32.mxu1 %vm184_vm0, %v171_v43  ;;  %1583 = vmatpush3.bf16.msra.mxu1 %v1580_v37 }
  0x2e   : > { %1368 = vmatmul.mubr.msk.f32.gmra.mrb[10].mxu0 %vm184_vm0, %v156_v40  ;;  %1585 = vmatprep.subr.bf16.mxu1 %v1584_v44 }
  0x2f   : > { %1370 = vmatprep.mubr.msk.f32.mxu0 %vm184_vm0, %v157_v41  ;;  %1617 = vmatprep.subr.bf16.mxu0 %v1616_v12 }
  0x30   : > { %1392 = vmatmul.mubr.msk.f32.gmra.mrb[10].mxu1 %vm184_vm0, %v172_v49  ;;  %1619 = vmatpush3.bf16.msra.mxu0 %v1616_v12 }
  0x31   : > { %1394 = vmatprep.mubr.msk.f32.mxu1 %vm184_vm0, %v173_v50  ;;  %1587 = vmatpush3.bf16.msra.mxu1 %v1584_v44 }
  0x32   : > { %1371 = vmatmul.mubr.msk.f32.gmra.mrb[12].mxu0 %vm184_vm0, %v158_v47  ;;  %1589 = vmatprep.subr.bf16.mxu1 %v1588_v51 }
  0x33   : > { %1373 = vmatprep.mubr.msk.f32.mxu0 %vm184_vm0, %v159_v48  ;;  %1621 = vmatprep.subr.bf16.mxu0 %v1620_v15 }
  0x34   : > { %1395 = vmatmul.mubr.msk.f32.gmra.mrb[12].mxu1 %vm184_vm0, %v174_v53  ;;  %1623 = vmatpush3.bf16.msra.mxu0 %v1620_v15 }
  0x35   : > { %1397 = vmatprep.mubr.msk.f32.mxu1 %vm184_vm0, %v175_v54  ;;  %1591 = vmatpush3.bf16.msra.mxu1 %v1588_v51 }
  0x36   : > { %1374 = vmatmul.mubr.msk.f32.gmra.mrb[14].mxu0 %vm184_vm0, %v160_v52  ;;  %1593 = vmatprep.subr.bf16.mxu1 %v1592_v58 }
  0x38   : > { %1398 = vmatmul.mubr.msk.f32.gmra.mrb[14].mxu1 %vm184_vm0, %v176_v55 }
  0x39   : > { %1595 = vmatpush3.bf16.msra.mxu1 %v1592_v58 }
  0xed   : > { %v1354_v17 = vpop.f32.mrb[0].mxu0 }
  0xee   : > { %v353_v18 = vadd.f32 %v1354_v17, %v1970_v16  ;;  %v347_v19 = vpop.f32.mrb[1].mxu0 }
  0xef   : > { %v348_v20 = vadd.f32 %v1970_v16, %v347_v19  ;;  %v1975_v26 = vpop.f32.mrb[0].mxu1 }
  0xf0   : > { %v507_v23 = vmax.f32 %v353_v18, 0.0  ;;  %v427_v28 = vpop.f32.mrb[1].mxu1  ;;  %v433_v19 = vadd.f32 %v1975_v26, %v1970_v16 }
  0xf1   : > { %v506_v21 = vmax.f32 %v348_v20, 0.0  ;;  %v1357_v22 = vpop.f32.mrb[2].mxu0  ;;  %v428_v7 = vadd.f32 %v1970_v16, %v427_v28 }
  0xf2   : > { %v363_v24 = vadd.f32 %v1357_v22, %v1970_v16  ;;  %v357_v25 = vpop.f32.mrb[3].mxu0 }
  0xf3   : > { %v358_v27 = vadd.f32 %v1970_v16, %v357_v25  ;;  %1432 = vmatprep.mubr.f32.mxu1 %v506_v21  ;;  %v1979_v34 = vpop.f32.mrb[2].mxu1  ;;  %v522_v15 = vmax.f32 %v428_v7, 0.0 }
  0xf4   : > { %1433 = vmatmul.mubr.f32.vlgmr.msra.gmra.mrb[16].mxu1 %v507_v23  ;;  %v509_v31 = vmax.f32 %v363_v24, 0.0  ;;  %v437_v36 = vpop.f32.mrb[3].mxu1  ;;  %v523_v24 = vmax.f32 %v433_v19, 0.0  ;;  %v443_v25 = vadd.f32 %v1979_v34, %v1970_v16 }
  0xf5   : > { %v508_v29 = vmax.f32 %v358_v27, 0.0  ;;  %v1360_v30 = vpop.f32.mrb[4].mxu0  ;;  %v438_v17 = vadd.f32 %v1970_v16, %v437_v36 }
  0xf6   : > { %v373_v32 = vadd.f32 %v1360_v30, %v1970_v16  ;;  %v367_v33 = vpop.f32.mrb[5].mxu0 }
  0xf7   : > { %v368_v35 = vadd.f32 %v1970_v16, %v367_v33  ;;  %1435 = vmatprep.mubr.f32.mxu1 %v508_v29  ;;  %v1983_v42 = vpop.f32.mrb[4].mxu1  ;;  %v524_v22 = vmax.f32 %v438_v17, 0.0  ;;  %v525_v29 = vmax.f32 %v443_v25, 0.0 }
  0xf8   : > { %1436 = vmatmul.mubr.f32.gmra.mrb[18].mxu1 %v509_v31  ;;  %v511_v39 = vmax.f32 %v373_v32, 0.0  ;;  %v447_v44 = vpop.f32.mrb[5].mxu1  ;;  %v453_v26 = vadd.f32 %v1983_v42, %v1970_v16 }
  0xf9   : > { %v510_v37 = vmax.f32 %v368_v35, 0.0  ;;  %v1363_v38 = vpop.f32.mrb[6].mxu0  ;;  %v448_v23 = vadd.f32 %v1970_v16, %v447_v44 }
  0xfa   : > { %v383_v40 = vadd.f32 %v1363_v38, %v1970_v16  ;;  %v377_v41 = vpop.f32.mrb[7].mxu0  ;;  %v527_v32 = vmax.f32 %v453_v26, 0.0 }
  0xfb   : > { %v378_v43 = vadd.f32 %v1970_v16, %v377_v41  ;;  %1438 = vmatprep.mubr.f32.mxu1 %v510_v37  ;;  %v1387_v50 = vpop.f32.mrb[6].mxu1  ;;  %v526_v27 = vmax.f32 %v448_v23, 0.0 }
  0xfc   : > { %1439 = vmatmul.mubr.f32.gmra.mrb[20].mxu1 %v511_v39  ;;  %v513_v47 = vmax.f32 %v383_v40, 0.0  ;;  %v457_v52 = vpop.f32.mrb[7].mxu1  ;;  %v463_v33 = vadd.f32 %v1387_v50, %v1970_v16  ;;  %v830_v50 = vld [vmem:[%s2183_s1 + $0x110] sm:$0xff] }
  0xfd   : > { %v512_v45 = vmax.f32 %v378_v43, 0.0  ;;  %v1366_v46 = vpop.f32.mrb[8].mxu0  ;;  %v458_v28 = vadd.f32 %v1970_v16, %v457_v52 }
  0xfe   : > { %v393_v48 = vadd.f32 %v1366_v46, %v1970_v16  ;;  %v387_v49 = vpop.f32.mrb[9].mxu0  ;;  %v529_v36 = vmax.f32 %v463_v33, 0.0 }
  0xff   : > { %v388_v51 = vadd.f32 %v1970_v16, %v387_v49  ;;  %1441 = vmatprep.mubr.f32.mxu1 %v512_v45  ;;  %v1390_v58 = vpop.f32.mrb[8].mxu1  ;;  %v528_v30 = vmax.f32 %v458_v28, 0.0 }
 0x100   : > { %1442 = vmatmul.mubr.f32.gmra.mrb[22].mxu1 %v513_v47  ;;  %v515_v55 = vmax.f32 %v393_v48, 0.0  ;;  %v467_v60 = vpop.f32.mrb[9].mxu1  ;;  %v473_v37 = vadd.f32 %v1390_v58, %v1970_v16 }
 0x101   : > { %v514_v53 = vmax.f32 %v388_v51, 0.0  ;;  %v1369_v54 = vpop.f32.mrb[10].mxu0  ;;  %v468_v31 = vadd.f32 %v1970_v16, %v467_v60  ;;  %v831_v51 = vld [vmem:[%s2183_s1 + $0x118] sm:$0xff] }
 0x102   : > { %v403_v56 = vadd.f32 %v1369_v54, %v1970_v16  ;;  %v397_v57 = vpop.f32.mrb[11].mxu0  ;;  %v531_v40 = vmax.f32 %v473_v37, 0.0  ;;  %v1624_v52 = vpack.c.bf16 %v831_v51, %v830_v50 }
 0x103   : > { %v398_v59 = vadd.f32 %v1970_v16, %v397_v57  ;;  %1444 = vmatprep.mubr.f32.mxu1 %v514_v53  ;;  %v1393_v2 = vpop.f32.mrb[10].mxu1  ;;  %v530_v35 = vmax.f32 %v468_v31, 0.0  ;;  %v2022_v53 = vld [vmem:[%s2183_s1 + $0x98] ss:$0 sm:$0xff] }
 0x104   : > { %1445 = vmatmul.mubr.f32.gmra.mrb[24].mxu1 %v515_v55  ;;  %v517_v63 = vmax.f32 %v403_v56, 0.0  ;;  %v477_v4 = vpop.f32.mrb[11].mxu1  ;;  %v483_v41 = vadd.f32 %v1393_v2, %v1970_v16  ;;  %1625 = vmatprep.subr.bf16.mxu0 %v1624_v52 }
 0x105   : > { %v516_v61 = vmax.f32 %v398_v59, 0.0  ;;  %v1372_v62 = vpop.f32.mrb[12].mxu0  ;;  %v478_v34 = vadd.f32 %v1970_v16, %v477_v4  ;;  %1627 = vmatpush3.bf16.msra.mxu0 %v1624_v52 }
 0x106   : > { %v413_v0 = vadd.f32 %v1372_v62, %v1970_v16  ;;  %v407_v1 = vpop.f32.mrb[13].mxu0  ;;  %v533_v44 = vmax.f32 %v483_v41, 0.0 }
 0x107   : > { %v408_v3 = vadd.f32 %v1970_v16, %v407_v1  ;;  %1447 = vmatprep.mubr.f32.mxu1 %v516_v61  ;;  %v1396_v11 = vpop.f32.mrb[12].mxu1  ;;  %v532_v38 = vmax.f32 %v478_v34, 0.0 }
 0x108   : > { %1448 = vmatmul.mubr.f32.gmra.mrb[26].mxu1 %v517_v63  ;;  %v519_v8 = vmax.f32 %v413_v0, 0.0  ;;  %v487_v13 = vpop.f32.mrb[13].mxu1  ;;  %v493_v45 = vadd.f32 %v1396_v11, %v1970_v16 }
 0x109   : > { %v518_v5 = vmax.f32 %v408_v3, 0.0  ;;  %v1375_v6 = vpop.f32.mrb[14].mxu0  ;;  %v488_v39 = vadd.f32 %v1970_v16, %v487_v13 }
 0x10a   : > { %v423_v9 = vadd.f32 %v1375_v6, %v1970_v16  ;;  %v417_v10 = vpop.f32.mrb[15].mxu0  ;;  %v535_v47 = vmax.f32 %v493_v45, 0.0 }
 0x10b   : > { %v418_v12 = vadd.f32 %v1970_v16, %v417_v10  ;;  %1450 = vmatprep.mubr.f32.mxu1 %v518_v5  ;;  %v1399_v20 = vpop.f32.mrb[14].mxu1  ;;  %v534_v42 = vmax.f32 %v488_v39, 0.0 }
 0x10c   : > { %1451 = vmatmul.mubr.f32.gmra.mrb[28].mxu1 %v519_v8  ;;  %v521_v18 = vmax.f32 %v423_v9, 0.0  ;;  %v497_v21 = vpop.f32.mrb[15].mxu1  ;;  %v503_v48 = vadd.f32 %v1399_v20, %v1970_v16 }
 0x10d   : > { %v520_v14 = vmax.f32 %v418_v12, 0.0  ;;  %v498_v43 = vadd.f32 %v1970_v16, %v497_v21 }
 0x10e   : > { %v537_v49 = vmax.f32 %v503_v48, 0.0 }
 0x10f   : > { %1453 = vmatprep.mubr.f32.mxu1 %v520_v14  ;;  %v536_v46 = vmax.f32 %v498_v43, 0.0 }
 0x110   : > { %1454 = vmatmul.mubr.f32.gmra.mrb[30].mxu1 %v521_v18 }
 0x111   : > { %1456 = vmatprep.mubr.f32.mxu1 %v522_v15 }
 0x114   : > { %1457 = vmatmul.mubr.f32.gmra.mrb[32].mxu1 %v523_v24 }
 0x115   : > { %1459 = vmatprep.mubr.f32.mxu1 %v524_v22 }
 0x118   : > { %1460 = vmatmul.mubr.f32.gmra.mrb[34].mxu1 %v525_v29 }
 0x119   : > { %1462 = vmatprep.mubr.f32.mxu1 %v526_v27 }
 0x11c   : > { %1463 = vmatmul.mubr.f32.gmra.mrb[36].mxu1 %v527_v32 }
 0x11d   : > { %1465 = vmatprep.mubr.f32.mxu1 %v528_v30 }
 0x120   : > { %1466 = vmatmul.mubr.f32.gmra.mrb[38].mxu1 %v529_v36 }
 0x121   : > { %1468 = vmatprep.mubr.f32.mxu1 %v530_v35 }
 0x124   : > { %1469 = vmatmul.mubr.f32.gmra.mrb[40].mxu1 %v531_v40 }
 0x125   : > { %1471 = vmatprep.mubr.f32.mxu1 %v532_v38 }
 0x128   : > { %1472 = vmatmul.mubr.f32.gmra.mrb[42].mxu1 %v533_v44 }
 0x129   : > { %1474 = vmatprep.mubr.f32.mxu1 %v534_v42 }
 0x12c   : > { %1475 = vmatmul.mubr.f32.gmra.mrb[44].mxu1 %v535_v47 }
 0x12d   : > { %1477 = vmatprep.mubr.f32.mxu1 %v536_v46 }
 0x130   : > { %1478 = vmatmul.mubr.f32.gmra.mrb[46].mxu1 %v537_v49 }
 0x1c7   : > { %v1434_v16 = vpop.f32.mrb[16].mxu1 }
 0x1c8   : > { %v631_v54 = vadd.f32 %v1434_v16, %v2022_v53  ;;  %v625_v55 = vpop.f32.mrb[17].mxu1 }
 0x1c9   : > { %v626_v56 = vadd.f32 %v2022_v53, %v625_v55 }
 0x1ca   : > { %v785_v59 = vmax.f32 %v631_v54, 0.0 }
 0x1cb   : > { %v784_v57 = vmax.f32 %v626_v56, 0.0  ;;  %v1437_v58 = vpop.f32.mrb[18].mxu1 }
 0x1cc   : > { %v641_v60 = vadd.f32 %v1437_v58, %v2022_v53  ;;  %v635_v61 = vpop.f32.mrb[19].mxu1 }
 0x1cd   : > { %v636_v62 = vadd.f32 %v2022_v53, %v635_v61  ;;  %1512 = vmatprep.mubr.f32.mxu0 %v784_v57 }
 0x1ce   : > { %1513 = vmatmul.mubr.f32.vlgmr.msra.gmra.mrb[16].mxu0 %v785_v59  ;;  %v787_v1 = vmax.f32 %v641_v60, 0.0 }
 0x1cf   : > { %v786_v63 = vmax.f32 %v636_v62, 0.0  ;;  %v1440_v0 = vpop.f32.mrb[20].mxu1 }
 0x1d0   : > { %v651_v2 = vadd.f32 %v1440_v0, %v2022_v53  ;;  %v645_v3 = vpop.f32.mrb[21].mxu1 }
 0x1d1   : > { %v646_v4 = vadd.f32 %v2022_v53, %v645_v3  ;;  %1515 = vmatprep.mubr.f32.mxu0 %v786_v63 }
 0x1d2   : > { %1516 = vmatmul.mubr.f32.gmra.mrb[18].mxu0 %v787_v1  ;;  %v789_v7 = vmax.f32 %v651_v2, 0.0 }
 0x1d3   : > { %v788_v5 = vmax.f32 %v646_v4, 0.0  ;;  %v1443_v6 = vpop.f32.mrb[22].mxu1 }
 0x1d4   : > { %v661_v8 = vadd.f32 %v1443_v6, %v2022_v53  ;;  %v655_v9 = vpop.f32.mrb[23].mxu1 }
 0x1d5   : > { %v656_v10 = vadd.f32 %v2022_v53, %v655_v9  ;;  %1518 = vmatprep.mubr.f32.mxu0 %v788_v5 }
 0x1d6   : > { %1519 = vmatmul.mubr.f32.gmra.mrb[20].mxu0 %v789_v7  ;;  %v791_v13 = vmax.f32 %v661_v8, 0.0 }
 0x1d7   : > { %v790_v11 = vmax.f32 %v656_v10, 0.0  ;;  %v1446_v12 = vpop.f32.mrb[24].mxu1 }
 0x1d8   : > { %v671_v14 = vadd.f32 %v1446_v12, %v2022_v53  ;;  %v665_v15 = vpop.f32.mrb[25].mxu1 }
 0x1d9   : > { %v666_v17 = vadd.f32 %v2022_v53, %v665_v15  ;;  %1521 = vmatprep.mubr.f32.mxu0 %v790_v11 }
 0x1da   : > { %1522 = vmatmul.mubr.f32.gmra.mrb[22].mxu0 %v791_v13  ;;  %v793_v20 = vmax.f32 %v671_v14, 0.0 }
 0x1db   : > { %v792_v18 = vmax.f32 %v666_v17, 0.0  ;;  %v1449_v19 = vpop.f32.mrb[26].mxu1 }
 0x1dc   : > { %v681_v21 = vadd.f32 %v1449_v19, %v2022_v53  ;;  %v675_v22 = vpop.f32.mrb[27].mxu1 }
 0x1dd   : > { %v676_v23 = vadd.f32 %v2022_v53, %v675_v22  ;;  %1524 = vmatprep.mubr.f32.mxu0 %v792_v18 }
 0x1de   : > { %1525 = vmatmul.mubr.f32.gmra.mrb[24].mxu0 %v793_v20  ;;  %v795_v27 = vmax.f32 %v681_v21, 0.0 }
 0x1df   : > { %v794_v24 = vmax.f32 %v676_v23, 0.0  ;;  %v1452_v25 = vpop.f32.mrb[28].mxu1  ;;  %v2062_v23 = vld [vmem:[%s2183_s1 + $0x120] ss:$0 sm:$0xff] }
 0x1e0   : > { %v691_v28 = vadd.f32 %v1452_v25, %v2022_v53  ;;  %v685_v29 = vpop.f32.mrb[29].mxu1 }
 0x1e1   : > { %v686_v26 = vadd.f32 %v2022_v53, %v685_v29  ;;  %1527 = vmatprep.mubr.f32.mxu0 %v794_v24 }
 0x1e2   : > { %1528 = vmatmul.mubr.f32.gmra.mrb[26].mxu0 %v795_v27  ;;  %v797_v32 = vmax.f32 %v691_v28, 0.0 }
 0x1e3   : > { %v796_v30 = vmax.f32 %v686_v26, 0.0  ;;  %v1455_v31 = vpop.f32.mrb[30].mxu1 }
 0x1e4   : > { %v701_v33 = vadd.f32 %v1455_v31, %v2022_v53  ;;  %v695_v35 = vpop.f32.mrb[31].mxu1 }
 0x1e5   : > { %v696_v34 = vadd.f32 %v2022_v53, %v695_v35  ;;  %1530 = vmatprep.mubr.f32.mxu0 %v796_v30 }
 0x1e6   : > { %1531 = vmatmul.mubr.f32.gmra.mrb[28].mxu0 %v797_v32  ;;  %v799_v38 = vmax.f32 %v701_v33, 0.0 }
 0x1e7   : > { %v798_v36 = vmax.f32 %v696_v34, 0.0  ;;  %v1458_v37 = vpop.f32.mrb[32].mxu1 }
 0x1e8   : > { %v711_v39 = vadd.f32 %v1458_v37, %v2022_v53  ;;  %v705_v40 = vpop.f32.mrb[33].mxu1 }
 0x1e9   : > { %v706_v41 = vadd.f32 %v2022_v53, %v705_v40  ;;  %1533 = vmatprep.mubr.f32.mxu0 %v798_v36 }
 0x1ea   : > { %1534 = vmatmul.mubr.f32.gmra.mrb[30].mxu0 %v799_v38  ;;  %v801_v44 = vmax.f32 %v711_v39, 0.0 }
 0x1eb   : > { %v800_v42 = vmax.f32 %v706_v41, 0.0  ;;  %v1461_v43 = vpop.f32.mrb[34].mxu1 }
 0x1ec   : > { %v721_v45 = vadd.f32 %v1461_v43, %v2022_v53  ;;  %v715_v46 = vpop.f32.mrb[35].mxu1 }
 0x1ed   : > { %v716_v47 = vadd.f32 %v2022_v53, %v715_v46  ;;  %1536 = vmatprep.mubr.f32.mxu0 %v800_v42 }
 0x1ee   : > { %1537 = vmatmul.mubr.f32.gmra.mrb[32].mxu0 %v801_v44  ;;  %v803_v50 = vmax.f32 %v721_v45, 0.0 }
 0x1ef   : > { %v802_v48 = vmax.f32 %v716_v47, 0.0  ;;  %v1464_v49 = vpop.f32.mrb[36].mxu1 }
 0x1f0   : > { %v731_v51 = vadd.f32 %v1464_v49, %v2022_v53  ;;  %v725_v52 = vpop.f32.mrb[37].mxu1 }
 0x1f1   : > { %v726_v16 = vadd.f32 %v2022_v53, %v725_v52  ;;  %1539 = vmatprep.mubr.f32.mxu0 %v802_v48 }
 0x1f2   : > { %1540 = vmatmul.mubr.f32.gmra.mrb[34].mxu0 %v803_v50  ;;  %v805_v56 = vmax.f32 %v731_v51, 0.0 }
 0x1f3   : > { %v804_v54 = vmax.f32 %v726_v16, 0.0  ;;  %v1467_v55 = vpop.f32.mrb[38].mxu1 }
 0x1f4   : > { %v741_v57 = vadd.f32 %v1467_v55, %v2022_v53  ;;  %v735_v58 = vpop.f32.mrb[39].mxu1 }
 0x1f5   : > { %v736_v59 = vadd.f32 %v2022_v53, %v735_v58  ;;  %1542 = vmatprep.mubr.f32.mxu0 %v804_v54 }
 0x1f6   : > { %1543 = vmatmul.mubr.f32.gmra.mrb[36].mxu0 %v805_v56  ;;  %v807_v62 = vmax.f32 %v741_v57, 0.0 }
 0x1f7   : > { %v806_v60 = vmax.f32 %v736_v59, 0.0  ;;  %v1470_v61 = vpop.f32.mrb[40].mxu1 }
 0x1f8   : > { %v751_v63 = vadd.f32 %v1470_v61, %v2022_v53  ;;  %v745_v0 = vpop.f32.mrb[41].mxu1 }
 0x1f9   : > { %v746_v1 = vadd.f32 %v2022_v53, %v745_v0  ;;  %1545 = vmatprep.mubr.f32.mxu0 %v806_v60 }
 0x1fa   : > { %1546 = vmatmul.mubr.f32.gmra.mrb[38].mxu0 %v807_v62  ;;  %v809_v4 = vmax.f32 %v751_v63, 0.0 }
 0x1fb   : > { %v808_v2 = vmax.f32 %v746_v1, 0.0  ;;  %v1473_v3 = vpop.f32.mrb[42].mxu1 }
 0x1fc   : > { %v761_v5 = vadd.f32 %v1473_v3, %v2022_v53  ;;  %v755_v6 = vpop.f32.mrb[43].mxu1 }
 0x1fd   : > { %v756_v7 = vadd.f32 %v2022_v53, %v755_v6  ;;  %1548 = vmatprep.mubr.f32.mxu0 %v808_v2 }
 0x1fe   : > { %1549 = vmatmul.mubr.f32.gmra.mrb[40].mxu0 %v809_v4  ;;  %v811_v10 = vmax.f32 %v761_v5, 0.0 }
 0x1ff   : > { %v810_v8 = vmax.f32 %v756_v7, 0.0  ;;  %v1476_v9 = vpop.f32.mrb[44].mxu1 }
 0x200   : > { %v771_v11 = vadd.f32 %v1476_v9, %v2022_v53  ;;  %v765_v12 = vpop.f32.mrb[45].mxu1 }
 0x201   : > { %v766_v13 = vadd.f32 %v2022_v53, %v765_v12  ;;  %1551 = vmatprep.mubr.f32.mxu0 %v810_v8 }
 0x202   : > { %1552 = vmatmul.mubr.f32.gmra.mrb[42].mxu0 %v811_v10  ;;  %v813_v17 = vmax.f32 %v771_v11, 0.0 }
 0x203   : > { %v812_v14 = vmax.f32 %v766_v13, 0.0  ;;  %v1479_v15 = vpop.f32.mrb[46].mxu1 }
 0x204   : > { %v781_v18 = vadd.f32 %v1479_v15, %v2022_v53  ;;  %v775_v19 = vpop.f32.mrb[47].mxu1 }
 0x205   : > { %v776_v20 = vadd.f32 %v2022_v53, %v775_v19  ;;  %1554 = vmatprep.mubr.f32.mxu0 %v812_v14 }
 0x206   : > { %1555 = vmatmul.mubr.f32.gmra.mrb[44].mxu0 %v813_v17  ;;  %v815_v22 = vmax.f32 %v781_v18, 0.0 }
 0x207   : > { %v814_v21 = vmax.f32 %v776_v20, 0.0 }
 0x209   : > { %1557 = vmatprep.mubr.f32.mxu0 %v814_v21 }
 0x20a   : > { %1558 = vmatmul.mubr.f32.gmra.mrb[46].mxu0 %v815_v22 }
 0x2a1   : > { %v1514_v24 = vpop.f32.mrb[16].mxu0 }
 0x2a2   : > { %v909_v25 = vadd.f32 %v1514_v24, %v2062_v23  ;;  %v903_v27 = vpop.f32.mrb[17].mxu0 }
 0x2a3   : > { %v904_v53 = vadd.f32 %v2062_v23, %v903_v27 }
 0x2a4   : > { %1063 = vst [vmem:[%s2066_s27 + $0x8] sm:$0xff] %v909_v25 }
 0x2a5   : > { %1062 = vst [vmem:[%s2066_s27] sm:$0xff] %v904_v53  ;;  %v1517_v28 = vpop.f32.mrb[18].mxu0 }
 0x2a6   : > { %v919_v29 = vadd.f32 %v1517_v28, %v2062_v23  ;;  %v913_v26 = vpop.f32.mrb[19].mxu0 }
 0x2a7   : > { %v914_v30 = vadd.f32 %v2062_v23, %v913_v26 }
 0x2a8   : > { %1065 = vst [vmem:[%s2066_s27 + $0x18] sm:$0xff] %v919_v29 }
 0x2a9   : > { %1064 = vst [vmem:[%s2066_s27 + $0x10] sm:$0xff] %v914_v30  ;;  %v1520_v31 = vpop.f32.mrb[20].mxu0 }
 0x2aa   : > { %v929_v32 = vadd.f32 %v1520_v31, %v2062_v23  ;;  %v923_v33 = vpop.f32.mrb[21].mxu0 }
 0x2ab   : > { %v924_v35 = vadd.f32 %v2062_v23, %v923_v33 }
 0x2ac   : > { %1067 = vst [vmem:[%s2066_s27 + $0x28] sm:$0xff] %v929_v32 }
 0x2ad   : > { %1066 = vst [vmem:[%s2066_s27 + $0x20] sm:$0xff] %v924_v35  ;;  %v1523_v34 = vpop.f32.mrb[22].mxu0 }
 0x2ae   : > { %v939_v36 = vadd.f32 %v1523_v34, %v2062_v23  ;;  %v933_v37 = vpop.f32.mrb[23].mxu0 }
 0x2af   : > { %v934_v38 = vadd.f32 %v2062_v23, %v933_v37 }
 0x2b0   : > { %1069 = vst [vmem:[%s2066_s27 + $0x38] sm:$0xff] %v939_v36 }
 0x2b1   : > { %1068 = vst [vmem:[%s2066_s27 + $0x30] sm:$0xff] %v934_v38  ;;  %v1526_v39 = vpop.f32.mrb[24].mxu0 }
 0x2b2   : > { %v949_v40 = vadd.f32 %v1526_v39, %v2062_v23  ;;  %v943_v41 = vpop.f32.mrb[25].mxu0 }
 0x2b3   : > { %v944_v42 = vadd.f32 %v2062_v23, %v943_v41 }
 0x2b4   : > { %1071 = vst [vmem:[%s2066_s27 + $0x48] sm:$0xff] %v949_v40 }
 0x2b5   : > { %1070 = vst [vmem:[%s2066_s27 + $0x40] sm:$0xff] %v944_v42  ;;  %v1529_v43 = vpop.f32.mrb[26].mxu0 }
 0x2b6   : > { %v959_v44 = vadd.f32 %v1529_v43, %v2062_v23  ;;  %v953_v45 = vpop.f32.mrb[27].mxu0 }
 0x2b7   : > { %v954_v46 = vadd.f32 %v2062_v23, %v953_v45 }
 0x2b8   : > { %1073 = vst [vmem:[%s2066_s27 + $0x58] sm:$0xff] %v959_v44 }
 0x2b9   : > { %1072 = vst [vmem:[%s2066_s27 + $0x50] sm:$0xff] %v954_v46  ;;  %v1532_v47 = vpop.f32.mrb[28].mxu0 }
 0x2ba   : > { %v969_v48 = vadd.f32 %v1532_v47, %v2062_v23  ;;  %v963_v49 = vpop.f32.mrb[29].mxu0 }
 0x2bb   : > { %v964_v50 = vadd.f32 %v2062_v23, %v963_v49 }
 0x2bc   : > { %1075 = vst [vmem:[%s2066_s27 + $0x68] sm:$0xff] %v969_v48 }
 0x2bd   : > { %1074 = vst [vmem:[%s2066_s27 + $0x60] sm:$0xff] %v964_v50  ;;  %v1535_v51 = vpop.f32.mrb[30].mxu0 }
 0x2be   : > { %v979_v52 = vadd.f32 %v1535_v51, %v2062_v23  ;;  %v973_v16 = vpop.f32.mrb[31].mxu0 }
 0x2bf   : > { %v974_v54 = vadd.f32 %v2062_v23, %v973_v16 }
 0x2c0   : > { %1077 = vst [vmem:[%s2066_s27 + $0x78] sm:$0xff] %v979_v52 }
 0x2c1   : > { %1076 = vst [vmem:[%s2066_s27 + $0x70] sm:$0xff] %v974_v54  ;;  %v1538_v55 = vpop.f32.mrb[32].mxu0 }
 0x2c2   : > { %v989_v56 = vadd.f32 %v1538_v55, %v2062_v23  ;;  %v983_v57 = vpop.f32.mrb[33].mxu0 }
 0x2c3   : > { %v984_v58 = vadd.f32 %v2062_v23, %v983_v57 }
 0x2c4   : > { %1079 = vst [vmem:[%s2066_s27 + $0x88] sm:$0xff] %v989_v56 }
 0x2c5   : > { %1078 = vst [vmem:[%s2066_s27 + $0x80] sm:$0xff] %v984_v58  ;;  %v1541_v59 = vpop.f32.mrb[34].mxu0 }
 0x2c6   : > { %v999_v60 = vadd.f32 %v1541_v59, %v2062_v23  ;;  %v993_v61 = vpop.f32.mrb[35].mxu0 }
 0x2c7   : > { %v994_v62 = vadd.f32 %v2062_v23, %v993_v61 }
 0x2c8   : > { %1081 = vst [vmem:[%s2066_s27 + $0x98] sm:$0xff] %v999_v60 }
 0x2c9   : > { %1080 = vst [vmem:[%s2066_s27 + $0x90] sm:$0xff] %v994_v62  ;;  %v1544_v63 = vpop.f32.mrb[36].mxu0 }
 0x2ca   : > { %v1009_v0 = vadd.f32 %v1544_v63, %v2062_v23  ;;  %v1003_v1 = vpop.f32.mrb[37].mxu0 }
 0x2cb   : > { %v1004_v2 = vadd.f32 %v2062_v23, %v1003_v1 }
 0x2cc   : > { %1083 = vst [vmem:[%s2066_s27 + $0xa8] sm:$0xff] %v1009_v0 }
 0x2cd   : > { %1082 = vst [vmem:[%s2066_s27 + $0xa0] sm:$0xff] %v1004_v2  ;;  %v1547_v3 = vpop.f32.mrb[38].mxu0 }
 0x2ce   : > { %v1019_v4 = vadd.f32 %v1547_v3, %v2062_v23  ;;  %v1013_v5 = vpop.f32.mrb[39].mxu0 }
 0x2cf   : > { %v1014_v6 = vadd.f32 %v2062_v23, %v1013_v5 }
 0x2d0   : > { %1085 = vst [vmem:[%s2066_s27 + $0xb8] sm:$0xff] %v1019_v4 }
 0x2d1   : > { %1084 = vst [vmem:[%s2066_s27 + $0xb0] sm:$0xff] %v1014_v6  ;;  %v1550_v7 = vpop.f32.mrb[40].mxu0 }
 0x2d2   : > { %v1029_v8 = vadd.f32 %v1550_v7, %v2062_v23  ;;  %v1023_v9 = vpop.f32.mrb[41].mxu0 }
 0x2d3   : > { %v1024_v10 = vadd.f32 %v2062_v23, %v1023_v9 }
 0x2d4   : > { %1087 = vst [vmem:[%s2066_s27 + $0xc8] sm:$0xff] %v1029_v8 }
 0x2d5   : > { %1086 = vst [vmem:[%s2066_s27 + $0xc0] sm:$0xff] %v1024_v10  ;;  %v1553_v11 = vpop.f32.mrb[42].mxu0 }
 0x2d6   : > { %v1039_v12 = vadd.f32 %v1553_v11, %v2062_v23  ;;  %v1033_v13 = vpop.f32.mrb[43].mxu0 }
 0x2d7   : > { %v1034_v14 = vadd.f32 %v2062_v23, %v1033_v13 }
 0x2d8   : > { %1089 = vst [vmem:[%s2066_s27 + $0xd8] sm:$0xff] %v1039_v12 }
 0x2d9   : > { %1088 = vst [vmem:[%s2066_s27 + $0xd0] sm:$0xff] %v1034_v14  ;;  %v1556_v15 = vpop.f32.mrb[44].mxu0 }
 0x2da   : > { %v1049_v17 = vadd.f32 %v1556_v15, %v2062_v23  ;;  %v1043_v18 = vpop.f32.mrb[45].mxu0 }
 0x2db   : > { %v1044_v19 = vadd.f32 %v2062_v23, %v1043_v18 }
 0x2dc   : > { %1091 = vst [vmem:[%s2066_s27 + $0xe8] sm:$0xff] %v1049_v17 }
 0x2dd   : > { %1090 = vst [vmem:[%s2066_s27 + $0xe0] sm:$0xff] %v1044_v19  ;;  %v1559_v20 = vpop.f32.mrb[46].mxu0 }
 0x2de   : > { %v1059_v21 = vadd.f32 %v1559_v20, %v2062_v23  ;;  %v1053_v22 = vpop.f32.mrb[47].mxu0 }
 0x2df   : > { %v1054_v24 = vadd.f32 %v2062_v23, %v1053_v22 }
 0x2e0   : > { %1093 = vst [vmem:[%s2066_s27 + $0xf8] sm:$0xff] %v1059_v21 }
 0x2e1   : > { %1092 = vst [vmem:[%s2066_s27 + $0xf0] sm:$0xff] %v1054_v24 }
 0x2e2   : > { %1684 = shalt.err (!%p1681_p3)
}
 0x2e3   : > { %s1685_s14 = scalar_lea.hbm %s2132_s3, 4096  ;;  %s1689_s21 = scalar_lea.hbm %s2184_s2, 8192 }
 0x2e4   : > { %p1686_p4 = scmp.ne.s32.totalorder %s2132_s3, %s1685_s14  ;;  %p1690_p9 = scmp.lt.u32.totalorder %s2132_s3, %s2184_s2 }
 0x2e5   : > { %p1691_p10 = scmp.lt.u32.totalorder %s1689_s21, %s1685_s14  ;;  %p1693_p12 = scmp.lt.u32.totalorder %s1685_s14, %s2132_s3 }
 0x2e6   : > { %p1687_p7 = pnand %p1686_p4, %p1791_p5 }
 0x2e7   : > { %p1692_p11 = por %p1691_p10, %p1690_p9 }
 0x2e8   : > { %p1688_p8 = pneg %p1687_p7 }
 0x2e9   : > { %p1694_p13 = por %p1693_p12, %p1692_p11 }
 0x2eb   : > { %p1695_p0 = pnand %p1694_p13, %p1688_p8 }
 0x2ed   : > { %1698 = shalt.err (!%p1695_p0)
}
 0x2ee   : > { %s1736_s24 = smov 128   ;;  %s1737_s25 = smov 8  }
 0x2ef   : > { %1630 = dma.vmem_to_hbm [thread:$0]  (%p1791_p5), %s2134_s28, 4096, %s2132_s3, %s2141_s13, %s1736_s24, %s1736_s24, %s1737_s25  }
 0x2f0 PF: > { %p1636_p1 = scmp.ge.s32.totalorder %s1733_s12, 2  ;;  %s1123_s26 = sand.u32 1, %s1721_s9  }
 0x2f1   : > { %s1124_s27 = scalar_lea.sflag [#allocation3], %s1123_s26 }
 0x2f2   : > { %p1633_p2 = pnand %p1636_p1, %p1795_p6 }
 0x2f4   : > { %1716 = dma.done.wait (!%p1633_p2), %s1124_s27, 4096  }
 0x2f5   : > { %1718 = vsyncadd (!%p1633_p2), %s1124_s27, 4294963200  ;;  %p12_p3 = scmp.ge.s32.totalorder %s1778_s15, 4   ;;  %s2187_s9 = smov %s1725_s10 }
 0x2f6   : > { %s2188_s10 = smov %s1729_s11  ;;  %s2189_s11 = smov %s1789_s18 }
 0x2f7   : > { %s2190_s12 = smov %s1778_s15  ;;  %14 = sbr.rel (!%p12_p3) target bundleno = 3 (0x3), region = 63 }
 0x2fe   :  { %1129 = vsyncpa [#allocation3], 1 }
 0x2ff   :  { %1131 = vsyncpa [#allocation3 + $0x1], 1 }

</bundles_post_ra>
